<compile_context>
chip_gen: v7x
topology: tpu7x:2x2x1
jax: 0.10.0
libtpu: 0.0.40
codegen_flags: <defaults>
</compile_context>

<pallas_src>
import functools

import jax
import jax.numpy as jnp
from jax.experimental import pallas as pl
from jax.experimental.pallas import tpu as pltpu

LANES = 128
SUBLANES = 8
H1, H2 = 120, 84  # logical hidden sizes of the PyTorch module


def _round_up(n, m):
    return ((n + m - 1) // m) * m


def _cdiv(a, b):
    return -(-a // b)


def qnetwork_kernel(x_ref, w1_ref, b1_ref, w2_ref, b2_ref, w3_ref, b3_ref,
                    out_ref):
    """One batch-tile of the 3-layer MLP. Hidden dims padded to 128 lanes."""
    x = x_ref[...].astype(jnp.bfloat16)                              # in-kernel cast
    # fc1 + ReLU  (MXU in bf16, accumulate f32, elementwise in f32)
    h1 = jnp.dot(x, w1_ref[...], preferred_element_type=jnp.float32)
    h1 = jnp.maximum(h1 + b1_ref[...], 0.0)                          # [Bt, 128] f32
    # fc2 + ReLU
    h2 = jnp.dot(h1.astype(jnp.bfloat16), w2_ref[...],
                 preferred_element_type=jnp.float32)
    h2 = jnp.maximum(h2 + b2_ref[...], 0.0)                          # [Bt, 128] f32
    # fc3 (no activation); store only the narrow useful lanes.
    h3 = jnp.dot(h2.astype(jnp.bfloat16), w3_ref[...],
                 preferred_element_type=jnp.float32)
    h3 = h3 + b3_ref[...]                                            # [Bt, 128] f32
    out_ref[...] = h3[:, : out_ref.shape[1]].astype(out_ref.dtype)   # [Bt, 8]


def init_params(key, obs_dim, n_actions):
    """f32 params mimicking nn.Linear's U(-1/sqrt(fan_in), 1/sqrt(fan_in)),
    stored as [in_features, out_features] (== PyTorch W.T)."""
    def linear(key, fan_in, fan_out):
        kw, kb = jax.random.split(key)
        bound = 1.0 / jnp.sqrt(float(fan_in))
        w = jax.random.uniform(kw, (fan_in, fan_out), jnp.float32, -bound, bound)
        b = jax.random.uniform(kb, (1, fan_out), jnp.float32, -bound, bound)
        return w, b

    k1, k2, k3 = jax.random.split(key, 3)
    w1, b1 = linear(k1, obs_dim, H1)
    w2, b2 = linear(k2, H1, H2)
    w3, b3 = linear(k3, H2, n_actions)
    return {"w1": w1, "b1": b1, "w2": w2, "b2": b2, "w3": w3, "b3": b3}


def prepare_params(params, obs_dim, n_actions):
    """Zero-pad feature dims to 128 lanes and cast weights to bf16 (biases f32)."""
    h1p = _round_up(H1, LANES)
    h2p = _round_up(H2, LANES)
    ap = _round_up(n_actions, LANES)

    def pad2(a, rows, cols):
        out = jnp.zeros((rows, cols), a.dtype)
        return out.at[: a.shape[0], : a.shape[1]].set(a)

    return {
        "w1": pad2(params["w1"], obs_dim, h1p).astype(jnp.bfloat16),
        "b1": pad2(params["b1"], 1, h1p),                        # f32
        "w2": pad2(params["w2"], h1p, h2p).astype(jnp.bfloat16),
        "b2": pad2(params["b2"], 1, h2p),                        # f32
        "w3": pad2(params["w3"], h2p, ap).astype(jnp.bfloat16),
        "b3": pad2(params["b3"], 1, ap),                         # f32
    }


@functools.partial(jax.jit, static_argnames=("n_actions", "block_batch"))
def qnetwork_forward(x, padded_params, *, n_actions, block_batch=1024):
    """x: [batch, obs_dim] f32.  Returns [batch, n_actions] f32 Q-values."""
    w1, b1 = padded_params["w1"], padded_params["b1"]
    w2, b2 = padded_params["w2"], padded_params["b2"]
    w3, b3 = padded_params["w3"], padded_params["b3"]

    B, obs_dim = x.shape
    out8 = _round_up(n_actions, SUBLANES)        # narrow (8-wide) output

    # Batch tile: >= 2 grid steps when possible (v7x megacore), multiple of 16
    # (bf16 sublane pack); ragged tail (<= 15 rows) is handled by Pallas, so
    # no wrapper-side batch padding / extra HBM copy.
    n_steps = max(1, _cdiv(B, block_batch))
    if B >= 2 * 16:
        n_steps = max(n_steps, 2)
    Bt = _round_up(_cdiv(B, n_steps), 16)
    Bt = min(Bt, _round_up(B, SUBLANES))
    grid = (_cdiv(B, Bt),)

    flops = 2 * B * (obs_dim * H1 + H1 * H2 + H2 * n_actions)
    bytes_accessed = int(
        B * obs_dim * 4 + B * out8 * 4
        + sum(int(p.size) * p.dtype.itemsize for p in padded_params.values()))

    batch_map = lambda i: (i, 0)
    pinned = lambda a: pl.BlockSpec(a.shape, lambda i: (0, 0))

    out = pl.pallas_call(
        qnetwork_kernel,
        out_shape=jax.ShapeDtypeStruct((B, out8), jnp.float32),
        grid=grid,
        in_specs=[
            pl.BlockSpec((Bt, obs_dim), batch_map),   # x: tiled over batch
            pinned(w1), pinned(b1),                   # weights/biases: resident
            pinned(w2), pinned(b2),
            pinned(w3), pinned(b3),
        ],
        out_specs=pl.BlockSpec((Bt, out8), batch_map),
        compiler_params=pltpu.CompilerParams(
            dimension_semantics=("parallel",)),        # 2-TC sharding on v7x
        cost_estimate=pl.CostEstimate(
            flops=flops, transcendentals=0, bytes_accessed=bytes_accessed),
    )(x, w1, b1, w2, b2, w3, b3)

    # out8 is only 8 lanes wide, so this trailing slice is near-free.
    return out[:, :n_actions]


def reference_forward(x, padded_params, n_actions):
    """Pure-JAX reference with identical numerics (bf16 MXU inputs, f32 acc)."""
    xb = x.astype(jnp.bfloat16)
    h1 = jnp.maximum(
        jnp.dot(xb, padded_params["w1"], preferred_element_type=jnp.float32)
        + padded_params["b1"], 0.0)
    h2 = jnp.maximum(
        jnp.dot(h1.astype(jnp.bfloat16), padded_params["w2"],
                preferred_element_type=jnp.float32) + padded_params["b2"], 0.0)
    h3 = (jnp.dot(h2.astype(jnp.bfloat16), padded_params["w3"],
                  preferred_element_type=jnp.float32) + padded_params["b3"])
    return h3[:, :n_actions]


if __name__ == "__main__":
    # Small synthetic sizes implied by the module:
    #   obs_dim = prod(env.observation_space[0].shape), n_actions = env.action_space[0].n
    obs_dim, n_actions = 16, 6

    key = jax.random.PRNGKey(0)
    kx1, kx2, kp = jax.random.split(key, 3)
    params = init_params(kp, obs_dim, n_actions)
    padded = prepare_params(params, obs_dim, n_actions)

    ok = True
    # (1) tiny batch (single grid step, block == full array)
    x_small = jax.random.normal(kx1, (8, obs_dim), jnp.float32)
    out_small = jax.block_until_ready(
        qnetwork_forward(x_small, padded, n_actions=n_actions))
    ref_small = reference_forward(x_small, padded, n_actions)
    ok &= out_small.shape == (8, n_actions)
    ok &= bool(jnp.allclose(out_small, ref_small, atol=1e-2, rtol=1e-2))

    # (2) non-multiple batch: exercises the 2-step grid and the ragged last block
    x_big = jax.random.normal(kx2, (600, obs_dim), jnp.float32)
    out_big = jax.block_until_ready(
        qnetwork_forward(x_big, padded, n_actions=n_actions))
    ref_big = reference_forward(x_big, padded, n_actions)
    ok &= out_big.shape == (600, n_actions)
    ok &= bool(jnp.allclose(out_big, ref_big, atol=1e-2, rtol=1e-2))

    assert ok, "Pallas output does not match reference"
    print("KERNEL_OK")
</pallas_src>

<mosaic_0001>
module attributes {stable_mosaic.version = 11 : i64} {
  func.func @qnetwork_kernel(%arg0: i32, %arg1: memref<8x16xf32, #tpu.memory_space<vmem>>, %arg2: memref<16x128xbf16, #tpu.memory_space<vmem>>, %arg3: memref<1x128xf32, #tpu.memory_space<vmem>>, %arg4: memref<128x128xbf16, #tpu.memory_space<vmem>>, %arg5: memref<1x128xf32, #tpu.memory_space<vmem>>, %arg6: memref<128x128xbf16, #tpu.memory_space<vmem>>, %arg7: memref<1x128xf32, #tpu.memory_space<vmem>>, %arg8: memref<8x8xf32, #tpu.memory_space<vmem>>) attributes {dimension_semantics = [#tpu.dimension_semantics<parallel>], iteration_bounds = array<i64: 1>, scalar_prefetch = 0 : i64, scratch_operands = 0 : i64, tpu.core_type = #tpu.core_type<tc>, window_params = [{transform_indices = @transform_0, window_bounds = array<i64: 8, 16>}, {pipeline_mode = #tpu.pipeline_mode<synchronous>, transform_indices = @transform_1, window_bounds = array<i64: 16, 128>}, {pipeline_mode = #tpu.pipeline_mode<synchronous>, transform_indices = @transform_2, window_bounds = array<i64: 1, 128>}, {pipeline_mode = #tpu.pipeline_mode<synchronous>, transform_indices = @transform_3, window_bounds = array<i64: 128, 128>}, {pipeline_mode = #tpu.pipeline_mode<synchronous>, transform_indices = @transform_4, window_bounds = array<i64: 1, 128>}, {pipeline_mode = #tpu.pipeline_mode<synchronous>, transform_indices = @transform_5, window_bounds = array<i64: 128, 128>}, {pipeline_mode = #tpu.pipeline_mode<synchronous>, transform_indices = @transform_6, window_bounds = array<i64: 1, 128>}, {transform_indices = @transform_7, window_bounds = array<i64: 8, 8>}]} {
    %c0 = arith.constant 0 : index
    %c0_0 = arith.constant 0 : index
    %0 = vector.load %arg1[%c0, %c0_0] : memref<8x16xf32, #tpu.memory_space<vmem>>, vector<8x16xf32>
    %1 = arith.truncf %0 : vector<8x16xf32> to vector<8x16xbf16>
    %c0_1 = arith.constant 0 : index
    %c0_2 = arith.constant 0 : index
    %2 = vector.load %arg2[%c0_1, %c0_2] : memref<16x128xbf16, #tpu.memory_space<vmem>>, vector<16x128xbf16>
    %cst = arith.constant dense<0.000000e+00> : vector<8x128xf32>
    %3 = tpu.matmul %1, %2, %cst {dimension_numbers = #tpu.dot_dimension_numbers<[1], [0], [0], [1], [0, 0, 1, 1], [], []>} : vector<8x16xbf16>, vector<16x128xbf16>, vector<8x128xf32> -> vector<8x128xf32>
    %c0_3 = arith.constant 0 : index
    %c0_4 = arith.constant 0 : index
    %4 = vector.load %arg3[%c0_3, %c0_4] : memref<1x128xf32, #tpu.memory_space<vmem>>, vector<1x128xf32>
    %5 = vector.broadcast %4 : vector<1x128xf32> to vector<8x128xf32>
    %6 = arith.addf %3, %5 : vector<8x128xf32>
    %cst_5 = arith.constant 0.000000e+00 : f32
    %7 = vector.broadcast %cst_5 : f32 to vector<8x128xf32>
    %8 = arith.maximumf %6, %7 : vector<8x128xf32>
    %9 = arith.truncf %8 : vector<8x128xf32> to vector<8x128xbf16>
    %c0_6 = arith.constant 0 : index
    %c0_7 = arith.constant 0 : index
    %10 = vector.load %arg4[%c0_6, %c0_7] : memref<128x128xbf16, #tpu.memory_space<vmem>>, vector<128x128xbf16>
    %cst_8 = arith.constant dense<0.000000e+00> : vector<8x128xf32>
    %11 = tpu.matmul %9, %10, %cst_8 {dimension_numbers = #tpu.dot_dimension_numbers<[1], [0], [0], [1], [0, 0, 1, 1], [], []>} : vector<8x128xbf16>, vector<128x128xbf16>, vector<8x128xf32> -> vector<8x128xf32>
    %c0_9 = arith.constant 0 : index
    %c0_10 = arith.constant 0 : index
    %12 = vector.load %arg5[%c0_9, %c0_10] : memref<1x128xf32, #tpu.memory_space<vmem>>, vector<1x128xf32>
    %13 = vector.broadcast %12 : vector<1x128xf32> to vector<8x128xf32>
    %14 = arith.addf %11, %13 : vector<8x128xf32>
    %cst_11 = arith.constant 0.000000e+00 : f32
    %15 = vector.broadcast %cst_11 : f32 to vector<8x128xf32>
    %16 = arith.maximumf %14, %15 : vector<8x128xf32>
    %17 = arith.truncf %16 : vector<8x128xf32> to vector<8x128xbf16>
    %c0_12 = arith.constant 0 : index
    %c0_13 = arith.constant 0 : index
    %18 = vector.load %arg6[%c0_12, %c0_13] : memref<128x128xbf16, #tpu.memory_space<vmem>>, vector<128x128xbf16>
    %cst_14 = arith.constant dense<0.000000e+00> : vector<8x128xf32>
    %19 = tpu.matmul %17, %18, %cst_14 {dimension_numbers = #tpu.dot_dimension_numbers<[1], [0], [0], [1], [0, 0, 1, 1], [], []>} : vector<8x128xbf16>, vector<128x128xbf16>, vector<8x128xf32> -> vector<8x128xf32>
    %c0_15 = arith.constant 0 : index
    %c0_16 = arith.constant 0 : index
    %20 = vector.load %arg7[%c0_15, %c0_16] : memref<1x128xf32, #tpu.memory_space<vmem>>, vector<1x128xf32>
    %21 = vector.broadcast %20 : vector<1x128xf32> to vector<8x128xf32>
    %22 = arith.addf %19, %21 : vector<8x128xf32>
    %23 = vector.extract_strided_slice %22 {offsets = [0, 0], sizes = [8, 8], strides = [1, 1]} : vector<8x128xf32> to vector<8x8xf32>
    %c0_17 = arith.constant 0 : index
    %c0_18 = arith.constant 0 : index
    %24 = vector.load %arg8[%c0_17, %c0_18] : memref<8x8xf32, #tpu.memory_space<vmem>>, vector<8x8xf32>
    tpu.vector_store %arg8[%c0_17, %c0_18], %23 {strides = array<i32>} : memref<8x8xf32, #tpu.memory_space<vmem>>, vector<8x8xf32>,
    return
  }
  func.func @transform_0(%arg0: i32) -> (i32, i32) {
    %c0_i32 = arith.constant 0 : i32
    %c0_i32_0 = arith.constant 0 : i32
    return %arg0, %c0_i32 : i32, i32
  }
  func.func @transform_1(%arg0: i32) -> (i32, i32) {
    %c0_i32 = arith.constant 0 : i32
    %c0_i32_0 = arith.constant 0 : i32
    %c0_i32_1 = arith.constant 0 : i32
    return %c0_i32, %c0_i32_0 : i32, i32
  }
  func.func @transform_2(%arg0: i32) -> (i32, i32) {
    %c0_i32 = arith.constant 0 : i32
    %c0_i32_0 = arith.constant 0 : i32
    %c0_i32_1 = arith.constant 0 : i32
    return %c0_i32, %c0_i32_0 : i32, i32
  }
  func.func @transform_3(%arg0: i32) -> (i32, i32) {
    %c0_i32 = arith.constant 0 : i32
    %c0_i32_0 = arith.constant 0 : i32
    %c0_i32_1 = arith.constant 0 : i32
    return %c0_i32, %c0_i32_0 : i32, i32
  }
  func.func @transform_4(%arg0: i32) -> (i32, i32) {
    %c0_i32 = arith.constant 0 : i32
    %c0_i32_0 = arith.constant 0 : i32
    %c0_i32_1 = arith.constant 0 : i32
    return %c0_i32, %c0_i32_0 : i32, i32
  }
  func.func @transform_5(%arg0: i32) -> (i32, i32) {
    %c0_i32 = arith.constant 0 : i32
    %c0_i32_0 = arith.constant 0 : i32
    %c0_i32_1 = arith.constant 0 : i32
    return %c0_i32, %c0_i32_0 : i32, i32
  }
  func.func @transform_6(%arg0: i32) -> (i32, i32) {
    %c0_i32 = arith.constant 0 : i32
    %c0_i32_0 = arith.constant 0 : i32
    %c0_i32_1 = arith.constant 0 : i32
    return %c0_i32, %c0_i32_0 : i32, i32
  }
  func.func @transform_7(%arg0: i32) -> (i32, i32) {
    %c0_i32 = arith.constant 0 : i32
    %c0_i32_0 = arith.constant 0 : i32
    return %arg0, %c0_i32 : i32, i32
  }
}

</mosaic_0001>

<bundles_post_ra>
// kernel: qnetwork_forward.1
= control target key start
LH: loop header
LB: loop body
LE: loop exit
PB: predicated region body
PF: predicated region fallthrough
CT: control target
= control target key end

     0   :  { %12 = vsyncpa [#allocation3], 0  ;;  %s712_s0 = inlined_call_operand.hbm [shape: f32[8,16], index: 0, kind: input, shape index: {}]   ;;  %s713_s1 = inlined_call_operand.vmem [shape: bf16[16,128], index: 1, kind: input, shape index: {}]   ;;  %s714_s2 = inlined_call_operand.vmem [shape: f32[1,128], index: 2, kind: input, shape index: {}]   ;;  %s715_s3 = inlined_call_operand.hbm [shape: bf16[128,128], index: 3, kind: input, shape index: {}]   ;;  %s716_s4 = inlined_call_operand.vmem [shape: f32[1,128], index: 4, kind: input, shape index: {}]   ;;  %s717_s5 = inlined_call_operand.hbm [shape: bf16[128,128], index: 5, kind: input, shape index: {}]   ;;  %s718_s6 = inlined_call_operand.vmem [shape: f32[1,128], index: 6, kind: input, shape index: {}]   ;;  %s719_s7 = inlined_call_operand.hbm [shape: f32[8,8], index: 7, kind: output, shape index: {}]  }
   0x1   :  { %13 = vsyncpa [#allocation6], 0 }
   0x2   :  { %14 = vsyncpa [#allocation4], 0  ;;  %s578_s24 = smov [#allocation5]   ;;  %s484_s28 = scalar_lea.hbm %s715_s3, 1024 }
   0x3   :  { %s34_s25 = sshll.u32 %s578_s24, 4  ;;  %p485_p0 = scmp.ne.s32.totalorder %s715_s3, %s484_s28  ;;  %s35_s25 = int_to_ptr.vmem [resolvable:$true] %s34_s25 }
   0x4   :  { %p488_p1 = scmp.lt.u32.totalorder %s484_s28, %s715_s3 }
   0x6   :  { %p490_p2 = pnand %p488_p1, %p485_p0 }
   0x8   :  { %493 = shalt.err (!%p490_p2)
}
   0x9   :  { %s494_s10 = scalar_lea.vmem %s35_s25, 1024  ;;  %p499_p4 = scmp.lt.s32.totalorder %s35_s25, %s35_s25 }
   0xa   :  { %p495_p3 = scmp.ne.s32.totalorder %s35_s25, %s494_s10  ;;  %p500_p5 = scmp.lt.s32.totalorder %s494_s10, %s494_s10 }
   0xc   :  { %p501_p6 = por %p500_p5, %p499_p4 }
   0xe   :  { %p502_p7 = pnand %p501_p6, %p495_p3 }
  0x10   :  { %505 = shalt.err (!%p502_p7)
}
  0x11   :  { %s579_s11 = smov 64   ;;  %s580_s12 = smov 4  }
  0x12   :  { %40 = dma.hbm_to_vmem [thread:$0]  %s715_s3, 1024, %s35_s25, [#allocation6], %s579_s11, %s579_s11, %s580_s12  }
  0x13   :  { %s581_s15 = smov [#allocation2]   ;;  %s582_s17 = smov [#allocation7]  }
  0x14   :  { %s21_s16 = sshll.u32 %s581_s15, 4  ;;  %s48_s18 = sshll.u32 %s582_s17, 4  ;;  %s22_s16 = int_to_ptr.vmem [resolvable:$true] %s21_s16  ;;  %s49_s18 = int_to_ptr.vmem [resolvable:$true] %s48_s18 }
  0x15   :  { %s506_s21 = scalar_lea.hbm %s712_s0, 128 }
  0x16   :  { %p507_p8 = scmp.ne.s32.totalorder %s712_s0, %s506_s21  ;;  %p510_p9 = scmp.lt.u32.totalorder %s506_s21, %s712_s0 }
  0x18   :  { %p512_p10 = pnand %p510_p9, %p507_p8 }
  0x1a   :  { %515 = shalt.err (!%p512_p10)
}
  0x1b   :  { %s516_s3 = scalar_lea.vmem %s22_s16, 128  ;;  %p521_p12 = scmp.lt.s32.totalorder %s22_s16, %s22_s16 }
  0x1c   :  { %p517_p11 = scmp.ne.s32.totalorder %s22_s16, %s516_s3  ;;  %p522_p13 = scmp.lt.s32.totalorder %s516_s3, %s516_s3 }
  0x1e   :  { %p523_p0 = por %p522_p13, %p521_p12 }
  0x20   :  { %p524_p1 = pnand %p523_p0, %p517_p11 }
  0x22   :  { %527 = shalt.err (!%p524_p1)
}
  0x23   :  { %24 = dma.hbm_to_vmem [thread:$0]  %s712_s0, 128, %s22_s16, [#allocation3]  }
  0x24   :  { %s528_s30 = scalar_lea.hbm %s717_s5, 1024 }
  0x25   :  { %p529_p2 = scmp.ne.s32.totalorder %s717_s5, %s528_s30  ;;  %p532_p3 = scmp.lt.u32.totalorder %s528_s30, %s717_s5 }
  0x27   :  { %p534_p4 = pnand %p532_p3, %p529_p2 }
  0x29   :  { %537 = shalt.err (!%p534_p4)
}
  0x2a   :  { %s538_s14 = scalar_lea.vmem %s49_s18, 1024  ;;  %p543_p6 = scmp.lt.s32.totalorder %s49_s18, %s49_s18 }
  0x2b   :  { %p539_p5 = scmp.ne.s32.totalorder %s49_s18, %s538_s14  ;;  %p544_p7 = scmp.lt.s32.totalorder %s538_s14, %s538_s14 }
  0x2d   :  { %p545_p8 = por %p544_p7, %p543_p6 }
  0x2f   :  { %p546_p9 = pnand %p545_p8, %p539_p5 }
  0x31   :  { %549 = shalt.err (!%p546_p9)
}
  0x32   :  { %54 = dma.hbm_to_vmem [thread:$0]  %s717_s5, 1024, %s49_s18, [#allocation6], %s579_s11, %s579_s11, %s580_s12  }
  0x33   :  { %572 = dma.done.wait [#allocation3], 128  }
  0x34   :  { %573 = vsyncadd [#allocation3], 4294967168 }
  0x35   :  { %574 = dma.done.wait [#allocation6], 2048  }
  0x36   :  { %575 = vsyncadd [#allocation6], 4294965248  ;;  %v583_v0 = vmov 0.0   ;;  %vm584_vm0 = vmmov 0   ;;  %v467_v1 = vld [vmem:[%s713_s1] sm:$0xff]   ;;  %vm84_vm1 = vcmask 130048  }
  0x37   :  { %413 = vmatprep.subr.bf16.mxu0 %v583_v0  ;;  %415 = vmatprep.mubr.msk.bf16.mxu0 %vm584_vm0, %v583_v0  ;;  %v67_v2 = vld [vmem:[#allocation2] sm:$0xff]  ;;  %v468_v4 = vld [vmem:[#allocation5] sm:$0xff]   ;;  %v469_v5 = vld [vmem:[#allocation5 + $0x8] sm:$0xff]   ;;  %s585_s19 = smov [#allocation8]   ;;  %vm354_vm2 = vcmask 64512  }
  0x38   :  { %419 = vmatprep.subr.bf16.mxu1 %v583_v0  ;;  %435 = vmatprep.mubr.msk.bf16.mxu1 %vm584_vm0, %v583_v0  ;;  %v68_v3 = vpack.c.bf16 %v67_v2, %v67_v2  ;;  %v470_v6 = vld [vmem:[#allocation5 + $0x10] sm:$0xff]   ;;  %v471_v7 = vld [vmem:[#allocation5 + $0x18] sm:$0xff]   ;;  %v472_v8 = vld [vmem:[#allocation5 + $0x20] sm:$0xff]   ;;  %s362_s20 = sshll.u32 %s585_s19, 4  ;;  %s363_s20 = int_to_ptr.vmem [resolvable:$true] %s362_s20 }
  0x39   :  { %414 = vmatpush3.bf16.msra.mxu0 %v467_v1  ;;  %420 = vmatpush3.bf16.msra.mxu1 %v468_v4  ;;  %v473_v9 = vld [vmem:[#allocation5 + $0x28] sm:$0xff]   ;;  %v474_v10 = vld [vmem:[#allocation5 + $0x30] sm:$0xff]   ;;  %v475_v11 = vld [vmem:[#allocation5 + $0x38] sm:$0xff]   ;;  %p555_p11 = scmp.lt.s32.totalorder %s363_s20, %s363_s20 }
  0x3a   :  { %439 = vmatprep.subr.bf16.mxu0 %v583_v0  ;;  %421 = vmatprep.subr.bf16.mxu1 %v583_v0  ;;  %v476_v12 = vld [vmem:[#allocation7] sm:$0xff]   ;;  %v477_v13 = vld [vmem:[#allocation7 + $0x8] sm:$0xff]   ;;  %v478_v14 = vld [vmem:[#allocation7 + $0x10] sm:$0xff]  }
  0x3b   :  { %v479_v15 = vld [vmem:[#allocation7 + $0x18] sm:$0xff]   ;;  %v480_v16 = vld [vmem:[#allocation7 + $0x20] sm:$0xff]   ;;  %v481_v17 = vld [vmem:[#allocation7 + $0x28] sm:$0xff]  }
  0x3c   :  { %416 = vmatmul.mubr.msk.bf16.vlgmr.msra.gmra.mrb[0].mxu0 %vm84_vm1, %v68_v3  ;;  %v372_v18 = vld [vmem:[%s714_s2] ss:$0 sm:$0xff]  ;;  %v482_v26 = vld [vmem:[#allocation7 + $0x30] sm:$0xff]  }
  0x3d   :  { %455 = vmatprep.mubr.msk.bf16.mxu0 %vm584_vm0, %v583_v0  ;;  %422 = vmatpush3.bf16.msra.mxu1 %v469_v5  ;;  %v483_v27 = vld [vmem:[#allocation7 + $0x38] sm:$0xff]  }
  0x3e   :  { %423 = vmatprep.subr.bf16.mxu1 %v583_v0  ;;  %440 = vmatpush3.bf16.msra.mxu0 %v476_v12  ;;  %v375_v28 = vld [vmem:[%s716_s4] ss:$0 sm:$0xff]  ;;  %s550_s4 = scalar_lea.vmem %s363_s20, 128 }
  0x3f   :  { %441 = vmatprep.subr.bf16.mxu0 %v583_v0  ;;  %v384_v36 = vld [vmem:[%s718_s6] ss:$0 sm:$0xff]  ;;  %p551_p10 = scmp.ne.s32.totalorder %s363_s20, %s550_s4  ;;  %p556_p12 = scmp.lt.s32.totalorder %s550_s4, %s550_s4 }
  0x41   :  { %424 = vmatpush3.bf16.msra.mxu1 %v470_v6  ;;  %p557_p13 = por %p556_p12, %p555_p11 }
  0x42   :  { %425 = vmatprep.subr.bf16.mxu1 %v583_v0  ;;  %442 = vmatpush3.bf16.msra.mxu0 %v477_v13 }
  0x43   :  { %443 = vmatprep.subr.bf16.mxu0 %v583_v0  ;;  %p558_p0 = pnand %p557_p13, %p551_p10 }
  0x45   :  { %426 = vmatpush3.bf16.msra.mxu1 %v471_v7 }
  0x46   :  { %427 = vmatprep.subr.bf16.mxu1 %v583_v0  ;;  %444 = vmatpush3.bf16.msra.mxu0 %v478_v14 }
  0x47   :  { %445 = vmatprep.subr.bf16.mxu0 %v583_v0 }
  0x49   :  { %428 = vmatpush3.bf16.msra.mxu1 %v472_v8 }
  0x4a   :  { %429 = vmatprep.subr.bf16.mxu1 %v583_v0  ;;  %446 = vmatpush3.bf16.msra.mxu0 %v479_v15 }
  0x4b   :  { %447 = vmatprep.subr.bf16.mxu0 %v583_v0 }
  0x4d   :  { %430 = vmatpush3.bf16.msra.mxu1 %v473_v9 }
  0x4e   :  { %431 = vmatprep.subr.bf16.mxu1 %v583_v0  ;;  %448 = vmatpush3.bf16.msra.mxu0 %v480_v16 }
  0x4f   :  { %449 = vmatprep.subr.bf16.mxu0 %v583_v0 }
  0x51   :  { %432 = vmatpush3.bf16.msra.mxu1 %v474_v10 }
  0x52   :  { %433 = vmatprep.subr.bf16.mxu1 %v583_v0  ;;  %450 = vmatpush3.bf16.msra.mxu0 %v481_v17 }
  0x53   :  { %451 = vmatprep.subr.bf16.mxu0 %v583_v0 }
  0x55   :  { %434 = vmatpush3.bf16.msra.mxu1 %v475_v11 }
  0x56   :  { %452 = vmatpush3.bf16.msra.mxu0 %v482_v26 }
  0x57   :  { %453 = vmatprep.subr.bf16.mxu0 %v583_v0 }
  0x5a   :  { %454 = vmatpush3.bf16.msra.mxu0 %v483_v27 }
 0x10f   :  { %v122_v19 = vpop.f32.mrb[0].mxu0 }
 0x110   :  { %v123_v20 = vadd.f32 %v372_v18, %v122_v19  ;;  %v417_v21 = vpop.f32.mrb[1].mxu0 }
 0x111   :  { %v125_v22 = vpop.f32.mrb[2].mxu0 }
 0x112   :  { %v128_v23 = vmax.f32 %v123_v20, 0.0  ;;  %v418_v24 = vpop.f32.mrb[3].mxu0 }
 0x114   :  { %v129_v25 = vpack.c.bf16 %v128_v23, %v128_v23 }
 0x116   :  { %436 = vmatmul.mubr.bf16.vlgmr.msra.gmra.mrb[0].mxu1 %v129_v25 }
 0x1e9   :  { %v235_v29 = vpop.f32.mrb[0].mxu1 }
 0x1ea   :  { %v236_v30 = vadd.f32 %v375_v28, %v235_v29  ;;  %v437_v31 = vpop.f32.mrb[1].mxu1 }
 0x1eb   :  { %v238_v32 = vpop.f32.mrb[2].mxu1 }
 0x1ec   :  { %v241_v33 = vmax.f32 %v236_v30, 0.0  ;;  %v438_v34 = vpop.f32.mrb[3].mxu1 }
 0x1ee   :  { %v242_v35 = vpack.c.bf16 %v241_v33, %v241_v33 }
 0x1f0   :  { %456 = vmatmul.mubr.bf16.vlgmr.msra.gmra.mrb[4].mxu0 %v242_v35 }
 0x2c3   :  { %v348_v37 = vpop.f32.mrb[4].mxu0 }
 0x2c4   :  { %v349_v38 = vadd.f32 %v384_v36, %v348_v37  ;;  %v457_v39 = vpop.f32.mrb[5].mxu0 }
 0x2c5   :  { %v351_v40 = vpop.f32.mrb[6].mxu0 }
 0x2c6   :  { %v458_v41 = vpop.f32.mrb[7].mxu0  ;;  %355 = vst.msk [vmem:[#allocation8] sm:$0xff] %vm354_vm2, %v349_v38 }
 0x2c7   :  { %561 = shalt.err (!%p558_p0)
}
 0x2c8   :  { %s562_s6 = scalar_lea.hbm %s719_s7, 128 }
 0x2c9   :  { %p563_p1 = scmp.ne.s32.totalorder %s719_s7, %s562_s6  ;;  %p566_p2 = scmp.lt.u32.totalorder %s562_s6, %s719_s7 }
 0x2cb   :  { %p568_p3 = pnand %p566_p2, %p563_p1 }
 0x2cd   :  { %571 = shalt.err (!%p568_p3)
}
 0x2ce   :  { %365 = dma.vmem_to_hbm [thread:$0]  %s363_s20, 128, %s719_s7, [#allocation4]  }
 0x2cf   :  { %576 = dma.done.wait [#allocation4], 128  }
 0x2d0   :  { %577 = vsyncadd [#allocation4], 4294967168 }
 0x2d1   :  { %369 = vsyncpa [#allocation3], 1 }
 0x2d2   :  { %370 = vsyncpa [#allocation6], 1 }
 0x2d3   :  { %371 = vsyncpa [#allocation4], 1 }

</bundles_post_ra>
